<compile_context>
chip_gen: v5e
topology: v5e:2x2
jax: 0.10.0
libtpu: 0.0.40
codegen_flags: <defaults>
</compile_context>

<pallas_src>
import functools
import math

import jax
import jax.numpy as jnp
from jax.experimental import pallas as pl
from jax.experimental.pallas import tpu as pltpu


def _memory_block_kernel(x_ref, mem_ref, out_ref, *, inv_temperature, threshold):
    # Fold the temperature into the (TB, D) LHS (cheaper than scaling the
    # (TB, M) logits), then feed bf16 operands to the MXU.
    x = x_ref[...].astype(jnp.float32) * inv_temperature
    x_bf = x.astype(jnp.bfloat16)              # (TB, D)
    mem_bf = mem_ref[...]                      # (M, D) bf16, resident

    # logits = (x / T) @ mem.T without materializing mem.T: contract dim 1 of
    # both operands (transposed-operand matmul, handled natively by the MXU).
    logits = jax.lax.dot_general(
        x_bf, mem_bf,
        dimension_numbers=(((1,), (1,)), ((), ())),
        preferred_element_type=jnp.float32,
    )                                          # (TB, M) f32

    # Softmax over the memory axis; denominator reciprocal goes to the EUP.
    m = jnp.max(logits, axis=1, keepdims=True)
    e = jnp.exp(logits - m)
    att = e * pl.reciprocal(jnp.sum(e, axis=1, keepdims=True), approx=True)

    if threshold > 0:
        eps = 1e-12
        shifted = att - threshold
        # att >= 0 after softmax, so |shifted| == shifted wherever the relu
        # numerator is non-zero; a single select replaces relu + abs, and the
        # divide becomes an EUP reciprocal.
        att = jnp.where(
            shifted > 0.0,
            att * (shifted * pl.reciprocal(shifted + eps, approx=True)),
            0.0,
        )
        # F.normalize(p=1, dim=1): att is non-negative post-shrink -> no abs.
        l1 = jnp.sum(att, axis=1, keepdims=True)
        att = att * pl.reciprocal(jnp.maximum(l1, eps), approx=True)

    # Read-out from memory: (TB, M) @ (M, D) on the MXU (bf16 in, f32 acc).
    out_ref[...] = jnp.dot(
        att.astype(jnp.bfloat16), mem_bf, preferred_element_type=jnp.float32
    ).astype(out_ref.dtype)


def _choose_tile_b(B):
    # Fill MXU row blocks while keeping >= 2 grid steps whenever the batch
    # allows (so the "parallel" axis can shard across both v7x TensorCores);
    # fall back to the full batch (full-array block is always legal).
    for cand in (256, 128, 64, 32, 16, 8):
        if B % cand == 0 and B // cand >= 2:
            return cand
    return B


def memory_block_forward(x, mem, *, temperature, threshold, tile_b=None):
    """x: (B, D) float32, mem: (M, D) float32 -> (B, D) float32."""
    B, D = x.shape
    M, Dm = mem.shape
    assert D == Dm
    if tile_b is None:
        tile_b = _choose_tile_b(B)
    assert B % tile_b == 0

    # Resident memory bank stored in VMEM as bf16 (half footprint / DMA).
    mem_bf = mem.astype(jnp.bfloat16)

    # VMEM budget: double-buffered x/out tiles (f32), double-buffered bf16 mem
    # block, plus headroom for (TB, M) intermediates. Never below the 32 MiB
    # default; capped at 48 MiB so it stays safe on v7x's 64 MiB VMEM.
    mib = 1024 * 1024
    est = (2 * M * D * 2            # mem (bf16, x2 buffers)
           + 4 * tile_b * D * 4     # x + out tiles (f32, x2 buffers each)
           + 2 * tile_b * M * 4     # att intermediates
           + 2 * mib)               # internal scratch headroom
    vmem_limit = min(48 * mib, max(32 * mib, est))

    kernel = functools.partial(
        _memory_block_kernel,
        inv_temperature=float(1.0 / temperature),
        threshold=float(threshold),
    )
    return pl.pallas_call(
        kernel,
        out_shape=jax.ShapeDtypeStruct((B, D), jnp.float32),
        grid_spec=pltpu.PrefetchScalarGridSpec(
            num_scalar_prefetch=0,
            grid=(B // tile_b,),
            in_specs=[
                pl.BlockSpec((tile_b, D), lambda i: (i, 0)),   # x tile
                pl.BlockSpec((M, D), lambda i: (0, 0)),        # full memory, resident
            ],
            out_specs=pl.BlockSpec((tile_b, D), lambda i: (i, 0)),
        ),
        compiler_params=pltpu.CompilerParams(
            dimension_semantics=("parallel",),
            vmem_limit_bytes=vmem_limit,
        ),
    )(x, mem_bf)


def reference_forward(x, mem, *, temperature, threshold):
    att = x @ mem.T
    att = jax.nn.softmax(att / temperature, axis=1)
    if threshold > 0:
        s = att - threshold
        att = jnp.maximum(s, 0.0) * att / (jnp.abs(s) + 1e-12)
        att = att / jnp.maximum(jnp.sum(jnp.abs(att), axis=1, keepdims=True), 1e-12)
    return att @ mem


if __name__ == "__main__":
    latent_dim = 32
    memory_size = 64
    threshold = 0.0025
    temperature = 0.5
    batch = 8

    key = jax.random.PRNGKey(0)
    kx, kmem = jax.random.split(key)

    # Deterministic parameter init mirroring _init_parameters:
    # mem ~ Uniform(-stdv, stdv), stdv = 1/sqrt(latent_dim)
    stdv = 1.0 / math.sqrt(latent_dim)
    mem = jax.random.uniform(
        kmem, (memory_size, latent_dim), jnp.float32, minval=-stdv, maxval=stdv
    )
    x = jax.random.normal(kx, (batch, latent_dim), jnp.float32)

    out = memory_block_forward(
        x, mem, temperature=temperature, threshold=threshold
    )
    out = jax.block_until_ready(out)

    ref = reference_forward(x, mem, temperature=temperature, threshold=threshold)
    assert out.shape == (batch, latent_dim)
    # bf16 MXU inputs + EUP approx reciprocals: compare at a relaxed tolerance.
    assert jnp.allclose(out, ref, atol=1e-2, rtol=1e-2), "mismatch vs reference"

    print("KERNEL_OK")
</pallas_src>

<mosaic_0001>
module attributes {stable_mosaic.version = 11 : i64} {
  func.func @_memory_block_kernel(%arg0: i32, %arg1: memref<8x32xf32, #tpu.memory_space<vmem>>, %arg2: memref<64x32xbf16, #tpu.memory_space<vmem>>, %arg3: memref<8x32xf32, #tpu.memory_space<vmem>>) attributes {dimension_semantics = [#tpu.dimension_semantics<parallel>], iteration_bounds = array<i64: 1>, scalar_prefetch = 0 : i64, scratch_operands = 0 : i64, tpu.core_type = #tpu.core_type<tc>, window_params = [{transform_indices = @transform_0, window_bounds = array<i64: 8, 32>}, {pipeline_mode = #tpu.pipeline_mode<synchronous>, transform_indices = @transform_1, window_bounds = array<i64: 64, 32>}, {transform_indices = @transform_2, window_bounds = array<i64: 8, 32>}]} {
    %c0 = arith.constant 0 : index
    %c0_0 = arith.constant 0 : index
    %0 = vector.load %arg1[%c0, %c0_0] : memref<8x32xf32, #tpu.memory_space<vmem>>, vector<8x32xf32>
    %cst = arith.constant 2.000000e+00 : f32
    %1 = vector.broadcast %cst : f32 to vector<8x32xf32>
    %2 = arith.mulf %0, %1 : vector<8x32xf32>
    %3 = arith.truncf %2 : vector<8x32xf32> to vector<8x32xbf16>
    %c0_1 = arith.constant 0 : index
    %c0_2 = arith.constant 0 : index
    %4 = vector.load %arg2[%c0_1, %c0_2] : memref<64x32xbf16, #tpu.memory_space<vmem>>, vector<64x32xbf16>
    %cst_3 = arith.constant dense<0.000000e+00> : vector<8x64xf32>
    %5 = tpu.matmul %3, %4, %cst_3 {dimension_numbers = #tpu.dot_dimension_numbers<[1], [1], [0], [0], [0, 0, 1, 0], [], []>} : vector<8x32xbf16>, vector<64x32xbf16>, vector<8x64xf32> -> vector<8x64xf32>
    %cst_4 = arith.constant dense<0xFF800000> : vector<8xf32>
    %6 = vector.multi_reduction <maximumf>, %5, %cst_4 [1] : vector<8x64xf32> to vector<8xf32>
    %7 = vector.shape_cast %6 : vector<8xf32> to vector<8x1xf32>
    %8 = vector.broadcast %7 : vector<8x1xf32> to vector<8x64xf32>
    %9 = arith.subf %5, %8 : vector<8x64xf32>
    %10 = math.exp %9 : vector<8x64xf32>
    %cst_5 = arith.constant dense<0.000000e+00> : vector<8xf32>
    %11 = vector.multi_reduction <add>, %10, %cst_5 [1] : vector<8x64xf32> to vector<8xf32>
    %12 = vector.shape_cast %11 : vector<8xf32> to vector<8x1xf32>
    %13 = tpu.reciprocal %12 {approx = true} : vector<8x1xf32> -> vector<8x1xf32>
    %14 = vector.broadcast %13 : vector<8x1xf32> to vector<8x64xf32>
    %15 = arith.mulf %10, %14 : vector<8x64xf32>
    %cst_6 = arith.constant 2.500000e-03 : f32
    %16 = vector.broadcast %cst_6 : f32 to vector<8x64xf32>
    %17 = arith.subf %15, %16 : vector<8x64xf32>
    %cst_7 = arith.constant 0.000000e+00 : f32
    %18 = vector.broadcast %cst_7 : f32 to vector<8x64xf32>
    %19 = arith.cmpf ogt, %17, %18 : vector<8x64xf32>
    %cst_8 = arith.constant 9.99999996E-13 : f32
    %20 = vector.broadcast %cst_8 : f32 to vector<8x64xf32>
    %21 = arith.addf %17, %20 : vector<8x64xf32>
    %22 = tpu.reciprocal %21 {approx = true} : vector<8x64xf32> -> vector<8x64xf32>
    %23 = arith.mulf %17, %22 : vector<8x64xf32>
    %24 = arith.mulf %15, %23 : vector<8x64xf32>
    %cst_9 = arith.constant 0.000000e+00 : f32
    %25 = vector.broadcast %cst_9 : f32 to vector<8x64xf32>
    %26 = arith.select %19, %24, %25 : vector<8x64xi1>, vector<8x64xf32>
    %cst_10 = arith.constant dense<0.000000e+00> : vector<8xf32>
    %27 = vector.multi_reduction <add>, %26, %cst_10 [1] : vector<8x64xf32> to vector<8xf32>
    %28 = vector.shape_cast %27 : vector<8xf32> to vector<8x1xf32>
    %cst_11 = arith.constant 9.99999996E-13 : f32
    %29 = vector.broadcast %cst_11 : f32 to vector<8x1xf32>
    %30 = arith.maximumf %28, %29 : vector<8x1xf32>
    %31 = tpu.reciprocal %30 {approx = true} : vector<8x1xf32> -> vector<8x1xf32>
    %32 = vector.broadcast %31 : vector<8x1xf32> to vector<8x64xf32>
    %33 = arith.mulf %26, %32 : vector<8x64xf32>
    %34 = arith.truncf %33 : vector<8x64xf32> to vector<8x64xbf16>
    %cst_12 = arith.constant dense<0.000000e+00> : vector<8x32xf32>
    %35 = tpu.matmul %34, %4, %cst_12 {dimension_numbers = #tpu.dot_dimension_numbers<[1], [0], [0], [1], [0, 0, 1, 1], [], []>} : vector<8x64xbf16>, vector<64x32xbf16>, vector<8x32xf32> -> vector<8x32xf32>
    %c0_13 = arith.constant 0 : index
    %c0_14 = arith.constant 0 : index
    %36 = vector.load %arg3[%c0_13, %c0_14] : memref<8x32xf32, #tpu.memory_space<vmem>>, vector<8x32xf32>
    tpu.vector_store %arg3[%c0_13, %c0_14], %35 {strides = array<i32>} : memref<8x32xf32, #tpu.memory_space<vmem>>, vector<8x32xf32>,
    return
  }
  func.func @transform_0(%arg0: i32) -> (i32, i32) {
    %c0_i32 = arith.constant 0 : i32
    %c0_i32_0 = arith.constant 0 : i32
    return %arg0, %c0_i32 : i32, i32
  }
  func.func @transform_1(%arg0: i32) -> (i32, i32) {
    %c0_i32 = arith.constant 0 : i32
    %c0_i32_0 = arith.constant 0 : i32
    %c0_i32_1 = arith.constant 0 : i32
    return %c0_i32, %c0_i32_0 : i32, i32
  }
  func.func @transform_2(%arg0: i32) -> (i32, i32) {
    %c0_i32 = arith.constant 0 : i32
    %c0_i32_0 = arith.constant 0 : i32
    return %arg0, %c0_i32 : i32, i32
  }
}

</mosaic_0001>

<bundles_post_ra>
// kernel: tpu_custom_call.1
= control target key start
LH: loop header
LB: loop body
LE: loop exit
PB: predicated region body
PF: predicated region fallthrough
CT: control target
= control target key end

     0   :  { %vm44_vm0 = vcmask 261120   ;;  %s238_s0 = inlined_call_operand.vmem [shape: f32[8,32], index: 0, kind: input, shape index: {}]   ;;  %s239_s1 = inlined_call_operand.vmem [shape: bf16[64,32], index: 1, kind: input, shape index: {}]   ;;  %s240_s2 = inlined_call_operand.hbm [shape: f32[8,32], index: 2, kind: output, shape index: {}]  }
   0x1   :  { %v158_v0 = vld [vmem:[%s239_s1 + $0x18] sm:$0xff] }
   0x2   :  { %7 = vsyncpa [#allocation3], 0  ;;  %v58_v1 = vsel %vm44_vm0, %v158_v0, 0  ;;  %110 = vmatpush.bf16.msra.mxu1 %v158_v0  ;;  %v157_v2 = vld [vmem:[%s239_s1 + $0x10] sm:$0xff]  ;;  %v156_v4 = vld [vmem:[%s239_s1 + $0x8] sm:$0xff]  ;;  %vm73_vm1 = vcmask 523264  }
   0x3   :  { %64 = vmatpush.bf16.xpose.msra.mxu0 %v58_v1  ;;  %v55_v3 = vsel %vm44_vm0, %v157_v2, 0  ;;  %v155_v5 = vld [vmem:[%s239_s1] sm:$0xff]  ;;  %v52_v6 = vsel %vm44_vm0, %v156_v4, 0  ;;  %s127_s21 = sshll.u32 %s240_s2, 4  ;;  %s128_s21 = int_to_ptr.hbm [resolvable:$true] %s127_s21 }
   0x4   :  { %v13_v7 = vld [vmem:[%s238_s0] sm:$0xff]  ;;  %v49_v8 = vsel %vm44_vm0, %v155_v5, 0  ;;  %s194_s0 = smov [#allocation2]  }
   0x5   :  { %v14_v9 = vmul.f32 2.0, %v13_v7  ;;  %s125_s1 = sshll.u32 %s194_s0, 4  ;;  %s126_s1 = int_to_ptr.vmem [resolvable:$true] %s125_s1 }
   0x6   :  { %111 = vmatpush.bf16.msra.mxu1 %v157_v2 }
   0x7   :  { %v15_v10 = vpack.c.bf16 %v14_v9, %v14_v9 }
   0xa   :  { %112 = vmatpush.bf16.msra.mxu1 %v156_v4 }
   0xb   :  { %65 = vmatpush.bf16.xpose.msra.mxu0 %v55_v3 }
   0xe   :  { %113 = vmatpush.bf16.msra.mxu1 %v155_v5 }
  0x13   :  { %66 = vmatpush.bf16.xpose.msra.mxu0 %v52_v6 }
  0x1b   :  { %67 = vmatpush.bf16.xpose.msra.mxu0 %v49_v8 }
  0x22   :  { %152 = vmatmul.msk.bf16.vlgmr.msra.gmra.mxu0 %vm44_vm0, %v15_v10 }
  0x9f   :  { %v69_v11 = vpop.f32.mrf.mxu0 }
  0xa0   :  { %v74_v12 = vsel %vm73_vm1, %v69_v11, -inf }
  0xa1   :  { %75 = vmax.xlane.f32.xlu0 %v74_v12 }
  0xa7   :  { %v71_v13 = vpop.f32.mrf.mxu0 }
 0x114   :  { %v76_v14 = vpop.xlane.xlu0 %75 }
 0x115   :  { %v77_v15 = vsub.f32 %v69_v11, %v76_v14 }
 0x117   :  { %v78_v16 = vmul.f32 1.442695, %v77_v15 }
 0x119   :  { %160 = vpow2.f32 %v78_v16 }
 0x11f   :  { %v161_v17 = vpop.eup %160 }
 0x120   :  { %v80_v18 = vsel %vm73_vm1, %v161_v17, 0.0 }
 0x121   :  { %81 = vadd.xlane.f32.xlu0 %v80_v18 }
 0x194   :  { %v82_v19 = vpop.xlane.xlu0 %81 }
 0x195   :  { %162 = vrcp.f32 %v82_v19 }
 0x19b   :  { %v163_v20 = vpop.eup %162 }
 0x19c   :  { %v84_v21 = vmul.f32 %v163_v20, %v161_v17 }
 0x19e   :  { %v153_v22 = vadd.f32 -0.0025, %v84_v21 }
 0x1a0   :  { %v87_v23 = vadd.f32 1e-12, %v153_v22  ;;  %vm86_vm2 = vcmp.gt.f32.partialorder %v153_v22, 0.0 }
 0x1a2   :  { %164 = vrcp.f32 %v87_v23 }
 0x1a8   :  { %v165_v24 = vpop.eup %164 }
 0x1a9   :  { %v89_v25 = vmul.f32 %v165_v24, %v153_v22 }
 0x1ab   :  { %v90_v26 = vmul.f32 %v89_v25, %v84_v21 }
 0x1ad   :  { %v91_v27 = vsel %vm86_vm2, %v90_v26, 0.0 }
 0x1ae   :  { %v92_v28 = vsel %vm73_vm1, %v91_v27, 0.0 }
 0x1af   :  { %93 = vadd.xlane.f32.xlu1 %v92_v28 }
 0x222   :  { %v94_v29 = vpop.xlane.xlu1 %93 }
 0x223   :  { %v95_v30 = vmax.f32 %v94_v29, 1e-12 }
 0x225   :  { %166 = vrcp.f32 %v95_v30 }
 0x22b   :  { %v167_v31 = vpop.eup %166 }
 0x22c   :  { %v97_v32 = vmul.f32 %v167_v31, %v91_v27 }
 0x22e   :  { %v98_v33 = vpack.c.bf16 %v97_v32, %v97_v32 }
 0x230   :  { %154 = vmatmul.msk.bf16.vlgmr.msra.gmra.mxu1 %vm73_vm1, %v98_v33 }
 0x2ad   :  { %v115_v34 = vpop.f32.mrf.mxu1 }
 0x2ae   :  { %119 = vst.msk [vmem:[#allocation2] sm:$0xff] %vm44_vm0, %v115_v34 }
 0x2af   :  { %130 = dma.vmem_to_hbm [thread:$0]  %s126_s1, 128, %s128_s21, [#allocation3]  }
 0x2b5   :  { %v117_v35 = vpop.f32.mrf.mxu1 }
 0x2b6   :  { %192 = dma.done.wait [#allocation3], 128  }
 0x2b7   :  { %193 = vsyncadd [#allocation3], 4294967168 }
 0x2b8   :  { %135 = vsyncpa [#allocation3], 1 }

</bundles_post_ra>
